<compile_context>
chip_gen: v7x
topology: tpu7x:2x2x1
jax: 0.10.0
libtpu: 0.0.40
codegen_flags: <defaults>
</compile_context>

<pallas_src>
import jax
import jax.numpy as jnp
import numpy as np
from jax.experimental import pallas as pl
from jax.experimental.pallas import tpu as pltpu


def _round_up(a, m):
    return ((a + m - 1) // m) * m


def tsk_kernel(x_ref, acat_ref, cconst_ref, er_ref, ed_ref, cvec_ref,
               waug_ref, bias_ref, out_ref):
    """One batch tile of the TSK forward pass (order=1, no bn/ln/dropout).

    Batch-on-lanes layout (batch is the last / lane axis everywhere):
      x_ref      : [D, TB]       input features (transposed)
      acat_ref   : [R, 2D]       [2*(wt*c).T | -wt.T]   (fused logits weight)
      cconst_ref : [R, 1]        sum_d wt * c^2 per rule
      er_ref     : [K, R]        0/1 rule-expansion matrix, K = R*(D+1)
      ed_ref     : [K, D]        0/1 feature-expansion matrix
      cvec_ref   : [K, 1]        1 at the constant-1 (zero-order) feature positions
      waug_ref   : [O, K]        fused consequent weight (first + zero order)
      bias_ref   : [O, 1]        consequent bias
      out_ref    : [O, TB]       output (transposed)
    """
    x = x_ref[...].astype(jnp.float32)                                    # [D, TB]

    # ---- firing-level logits: one fused MXU matmul (expanded quadratic form) ----
    # -sum_d (x - c)^2 * wt  ==  [2*wt*c | -wt] @ [x ; x*x]  -  sum_d wt*c^2
    xcat = jnp.concatenate([x, x * x], axis=0)                            # [2D, TB]
    logits = (jnp.dot(acat_ref[...], xcat, preferred_element_type=jnp.float32)
              - cconst_ref[...])                                          # [R, TB]

    # ---- softmax over rules (sublane axis), exact division ----------------------
    m = jnp.max(logits, axis=0, keepdims=True)                            # [1, TB]
    e = jnp.exp(logits - m)                                               # [R, TB]
    s = jnp.sum(e, axis=0, keepdims=True)                                 # [1, TB]
    frs = e * (1.0 / s)                                                   # [R, TB]

    # ---- first-order consequent (zero-order term fused via constant-1 feature) --
    # feat[r*(D+1)+d, b] = frs[r, b] * x[d, b]   for d < D
    # feat[r*(D+1)+D, b] = frs[r, b]             (zero-order / constant-1 feature)
    frs_rep = jnp.dot(er_ref[...], frs, preferred_element_type=jnp.float32)   # [K, TB]
    x_rep = (jnp.dot(ed_ref[...], x, preferred_element_type=jnp.float32)
             + cvec_ref[...])                                             # [K, TB]
    feat = frs_rep * x_rep                                                # [K, TB]

    out = (jnp.dot(waug_ref[...], feat, preferred_element_type=jnp.float32)
           + bias_ref[...])                                               # [O, TB]
    out_ref[...] = out.astype(out_ref.dtype)


def tsk_prepare_params(centers, sigmas, W, b, *, h=0.5, eps=1e-8):
    """One-time parameter re-layout into the batch-on-lanes kernel layout."""
    D, R = centers.shape
    O = b.shape[0]
    RD = R * D
    assert W.shape == (O, (D + 1) * R)
    D1 = D + 1
    K = R * D1

    centers = jnp.asarray(centers, jnp.float32)
    wt = h / (jnp.asarray(sigmas, jnp.float32) ** 2 + eps)                # [D, R]
    wc = wt * centers                                                     # [D, R]
    a_cat = jnp.concatenate([2.0 * wc.T, -wt.T], axis=1)                  # [R, 2D]
    cconst = jnp.sum(wt * centers * centers, axis=0)[:, None]             # [R, 1]

    k = np.arange(K)
    er = (k[:, None] // D1 == np.arange(R)[None, :]).astype(np.float32)   # [K, R]
    ed = (k[:, None] % D1 == np.arange(D)[None, :]).astype(np.float32)    # [K, D]
    cvec = ((k % D1) == D).astype(np.float32)[:, None]                    # [K, 1]

    # Fused consequent weight: w_aug[o, r*(D+1)+d] = W[o, r*D+d] for d<D,
    #                          w_aug[o, r*(D+1)+D] = W[o, R*D+r]  (zero-order part).
    W = jnp.asarray(W, jnp.float32)
    wx = W[:, :RD].reshape(O, R, D)
    wf = W[:, RD:].reshape(O, R, 1)
    w_aug = jnp.concatenate([wx, wf], axis=2).reshape(O, K)               # [O, K]

    bias = jnp.asarray(b, jnp.float32).reshape(O, 1)                      # [O, 1]

    return dict(a_cat=a_cat, cconst=cconst,
                er=jnp.asarray(er), ed=jnp.asarray(ed), cvec=jnp.asarray(cvec),
                w_aug=w_aug, bias=bias, dims=(D, R, O, D1))


def tsk_forward(x, prep, *, block_b=None):
    """Pallas wrapper reproducing TSK.forward (order=1, no bn/ln/dropout).

    x : [batch, in_dim] (module layout); transposed once here to batch-on-lanes.
    """
    B, D = x.shape
    D_p, R, O, D1 = prep["dims"]
    assert D == D_p
    K = R * D1

    # Lane-dense batch tiles (multiples of 128).  Default: tiles of up to 1024 lanes,
    # keeping >= 2 "parallel" grid steps when possible so both v7x TensorCores get work
    # (the extra ~0.35us step is negligible on single-TC v5e/v6e).
    if block_b is None:
        Bq = _round_up(B, 128)
        if Bq <= 256:
            bb = Bq
        else:
            bb = min(1024, _round_up(Bq // 2, 128))
    else:
        bb = _round_up(min(block_b, B), 128)
    Bp = _round_up(B, bb)

    xt = x.T                                                              # [D, B]
    if Bp != B:
        xt = jnp.pad(xt, ((0, 0), (0, Bp - B)))   # zero columns stay finite in exp()
    grid = (Bp // bb,)

    out_t = pl.pallas_call(
        tsk_kernel,
        out_shape=jax.ShapeDtypeStruct((O, Bp), x.dtype),
        grid_spec=pltpu.PrefetchScalarGridSpec(
            num_scalar_prefetch=0,
            grid=grid,
            in_specs=[
                pl.BlockSpec((D, bb), lambda i: (0, i)),      # x (tiled over batch lanes)
                pl.BlockSpec((R, 2 * D), lambda i: (0, 0)),   # fused logits weight
                pl.BlockSpec((R, 1), lambda i: (0, 0)),       # sum_d wt*c^2
                pl.BlockSpec((K, R), lambda i: (0, 0)),       # rule expansion matrix
                pl.BlockSpec((K, D), lambda i: (0, 0)),       # feature expansion matrix
                pl.BlockSpec((K, 1), lambda i: (0, 0)),       # constant-1 feature mask
                pl.BlockSpec((O, K), lambda i: (0, 0)),       # fused consequent weight
                pl.BlockSpec((O, 1), lambda i: (0, 0)),       # bias
            ],
            out_specs=pl.BlockSpec((O, bb), lambda i: (0, i)),
        ),
        compiler_params=pltpu.CompilerParams(
            dimension_semantics=("parallel",),
        ),
    )(xt, prep["a_cat"], prep["cconst"], prep["er"], prep["ed"], prep["cvec"],
      prep["w_aug"], prep["bias"])

    if Bp != B:
        out_t = out_t[:, :B]
    return out_t.T                                                        # [B, O]


def tsk_reference(x, centers, sigmas, W, b, *, h=0.5, eps=1e-8):
    """Pure-JAX transcription of the PyTorch forward (order=1, defaults)."""
    B, D = x.shape
    R = centers.shape[1]
    logits = jnp.sum(
        -((x[:, :, None] - centers[None, :, :]) ** 2) * (h / (sigmas ** 2 + eps))[None],
        axis=1,
    )
    frs = jax.nn.softmax(logits, axis=1)                                  # [B, R]
    Xe = jnp.broadcast_to(x[:, None, :], (B, R, D)) * frs[:, :, None]
    feat = jnp.concatenate([Xe.reshape(B, R * D), frs], axis=1)           # [B, (D+1)*R]
    return feat @ W.T + b


if __name__ == "__main__":
    # Shapes consistent with the module: X is [batch, in_dim].
    # B=512 with the default tiling gives a 2-step parallel grid (both v7x TCs busy).
    B, D, R, O = 512, 8, 16, 8          # batch, in_dim, n_rules, out_dim
    sigma_scale = 1.0

    key = jax.random.PRNGKey(0)
    k_c, k_w, k_b, k_x = jax.random.split(key, 4)

    # Deterministic parameter init matching the module's shapes:
    #   centers ~ N(0, 1)  [in_dim, n_rules],  sigmas = sigma_scale * ones,
    #   cons = Linear((in_dim+1)*n_rules, out_dim)  (uniform +-1/sqrt(fan_in)).
    centers = jax.random.normal(k_c, (D, R), jnp.float32)
    sigmas = jnp.ones((D, R), jnp.float32) * sigma_scale
    fan_in = (D + 1) * R
    bound = 1.0 / np.sqrt(fan_in)
    W = jax.random.uniform(k_w, (O, fan_in), jnp.float32, -bound, bound)
    b = jax.random.uniform(k_b, (O,), jnp.float32, -bound, bound)

    x = jax.random.normal(k_x, (B, D), jnp.float32)

    prep = tsk_prepare_params(centers, sigmas, W, b)          # one-time re-layout
    out = tsk_forward(x, prep)
    out = jax.block_until_ready(out)

    ref = jax.block_until_ready(tsk_reference(x, centers, sigmas, W, b))
    np.testing.assert_allclose(np.asarray(out), np.asarray(ref), rtol=1e-3, atol=5e-4)

    print("KERNEL_OK")
</pallas_src>

<mosaic_0001>
module attributes {stable_mosaic.version = 11 : i64} {
  func.func @tsk_kernel(%arg0: i32, %arg1: memref<8x256xf32, #tpu.memory_space<vmem>>, %arg2: memref<16x16xf32, #tpu.memory_space<vmem>>, %arg3: memref<16x1xf32, #tpu.memory_space<vmem>>, %arg4: memref<144x16xf32, #tpu.memory_space<vmem>>, %arg5: memref<144x8xf32, #tpu.memory_space<vmem>>, %arg6: memref<144x1xf32, #tpu.memory_space<vmem>>, %arg7: memref<8x144xf32, #tpu.memory_space<vmem>>, %arg8: memref<8x1xf32, #tpu.memory_space<vmem>>, %arg9: memref<8x256xf32, #tpu.memory_space<vmem>>) attributes {dimension_semantics = [#tpu.dimension_semantics<parallel>], iteration_bounds = array<i64: 2>, scalar_prefetch = 0 : i64, scratch_operands = 0 : i64, tpu.core_type = #tpu.core_type<tc>, window_params = [{transform_indices = @transform_0, window_bounds = array<i64: 8, 256>}, {pipeline_mode = #tpu.pipeline_mode<synchronous>, transform_indices = @transform_1, window_bounds = array<i64: 16, 16>}, {pipeline_mode = #tpu.pipeline_mode<synchronous>, transform_indices = @transform_2, window_bounds = array<i64: 16, 1>}, {pipeline_mode = #tpu.pipeline_mode<synchronous>, transform_indices = @transform_3, window_bounds = array<i64: 144, 16>}, {pipeline_mode = #tpu.pipeline_mode<synchronous>, transform_indices = @transform_4, window_bounds = array<i64: 144, 8>}, {pipeline_mode = #tpu.pipeline_mode<synchronous>, transform_indices = @transform_5, window_bounds = array<i64: 144, 1>}, {pipeline_mode = #tpu.pipeline_mode<synchronous>, transform_indices = @transform_6, window_bounds = array<i64: 8, 144>}, {pipeline_mode = #tpu.pipeline_mode<synchronous>, transform_indices = @transform_7, window_bounds = array<i64: 8, 1>}, {transform_indices = @transform_8, window_bounds = array<i64: 8, 256>}]} {
    %c0 = arith.constant 0 : index
    %c0_0 = arith.constant 0 : index
    %0 = vector.load %arg1[%c0, %c0_0] : memref<8x256xf32, #tpu.memory_space<vmem>>, vector<8x256xf32>
    %1 = arith.mulf %0, %0 : vector<8x256xf32>
    %2 = tpu.concatenate %0, %1 in 0 : vector<8x256xf32>, vector<8x256xf32> -> vector<16x256xf32>
    %c0_1 = arith.constant 0 : index
    %c0_2 = arith.constant 0 : index
    %3 = vector.load %arg2[%c0_1, %c0_2] : memref<16x16xf32, #tpu.memory_space<vmem>>, vector<16x16xf32>
    %cst = arith.constant dense<0.000000e+00> : vector<16x256xf32>
    %4 = tpu.matmul %3, %2, %cst {dimension_numbers = #tpu.dot_dimension_numbers<[1], [0], [0], [1], [0, 0, 1, 1], [], []>} : vector<16x16xf32>, vector<16x256xf32>, vector<16x256xf32> -> vector<16x256xf32>
    %c0_3 = arith.constant 0 : index
    %c0_4 = arith.constant 0 : index
    %5 = vector.load %arg3[%c0_3, %c0_4] : memref<16x1xf32, #tpu.memory_space<vmem>>, vector<16x1xf32>
    %6 = vector.broadcast %5 : vector<16x1xf32> to vector<16x256xf32>
    %7 = arith.subf %4, %6 : vector<16x256xf32>
    %cst_5 = arith.constant dense<0xFF800000> : vector<256xf32>
    %8 = vector.multi_reduction <maximumf>, %7, %cst_5 [0] : vector<16x256xf32> to vector<256xf32>
    %9 = vector.shape_cast %8 : vector<256xf32> to vector<1x256xf32>
    %10 = vector.broadcast %9 : vector<1x256xf32> to vector<16x256xf32>
    %11 = arith.subf %7, %10 : vector<16x256xf32>
    %12 = math.exp %11 : vector<16x256xf32>
    %cst_6 = arith.constant dense<0.000000e+00> : vector<256xf32>
    %13 = vector.multi_reduction <add>, %12, %cst_6 [0] : vector<16x256xf32> to vector<256xf32>
    %14 = vector.shape_cast %13 : vector<256xf32> to vector<1x256xf32>
    %cst_7 = arith.constant 1.000000e+00 : f32
    %15 = vector.broadcast %cst_7 : f32 to vector<1x256xf32>
    %16 = arith.divf %15, %14 : vector<1x256xf32>
    %17 = vector.broadcast %16 : vector<1x256xf32> to vector<16x256xf32>
    %18 = arith.mulf %12, %17 : vector<16x256xf32>
    %c0_8 = arith.constant 0 : index
    %c0_9 = arith.constant 0 : index
    %19 = vector.load %arg4[%c0_8, %c0_9] : memref<144x16xf32, #tpu.memory_space<vmem>>, vector<144x16xf32>
    %cst_10 = arith.constant dense<0.000000e+00> : vector<144x256xf32>
    %20 = tpu.matmul %19, %18, %cst_10 {dimension_numbers = #tpu.dot_dimension_numbers<[1], [0], [0], [1], [0, 0, 1, 1], [], []>} : vector<144x16xf32>, vector<16x256xf32>, vector<144x256xf32> -> vector<144x256xf32>
    %c0_11 = arith.constant 0 : index
    %c0_12 = arith.constant 0 : index
    %21 = vector.load %arg5[%c0_11, %c0_12] : memref<144x8xf32, #tpu.memory_space<vmem>>, vector<144x8xf32>
    %cst_13 = arith.constant dense<0.000000e+00> : vector<144x256xf32>
    %22 = tpu.matmul %21, %0, %cst_13 {dimension_numbers = #tpu.dot_dimension_numbers<[1], [0], [0], [1], [0, 0, 1, 1], [], []>} : vector<144x8xf32>, vector<8x256xf32>, vector<144x256xf32> -> vector<144x256xf32>
    %c0_14 = arith.constant 0 : index
    %c0_15 = arith.constant 0 : index
    %23 = vector.load %arg6[%c0_14, %c0_15] : memref<144x1xf32, #tpu.memory_space<vmem>>, vector<144x1xf32>
    %24 = vector.broadcast %23 : vector<144x1xf32> to vector<144x256xf32>
    %25 = arith.addf %22, %24 : vector<144x256xf32>
    %26 = arith.mulf %20, %25 : vector<144x256xf32>
    %c0_16 = arith.constant 0 : index
    %c0_17 = arith.constant 0 : index
    %27 = vector.load %arg7[%c0_16, %c0_17] : memref<8x144xf32, #tpu.memory_space<vmem>>, vector<8x144xf32>
    %cst_18 = arith.constant dense<0.000000e+00> : vector<8x256xf32>
    %28 = tpu.matmul %27, %26, %cst_18 {dimension_numbers = #tpu.dot_dimension_numbers<[1], [0], [0], [1], [0, 0, 1, 1], [], []>} : vector<8x144xf32>, vector<144x256xf32>, vector<8x256xf32> -> vector<8x256xf32>
    %c0_19 = arith.constant 0 : index
    %c0_20 = arith.constant 0 : index
    %29 = vector.load %arg8[%c0_19, %c0_20] : memref<8x1xf32, #tpu.memory_space<vmem>>, vector<8x1xf32>
    %30 = vector.broadcast %29 : vector<8x1xf32> to vector<8x256xf32>
    %31 = arith.addf %28, %30 : vector<8x256xf32>
    %c0_21 = arith.constant 0 : index
    %c0_22 = arith.constant 0 : index
    %32 = vector.load %arg9[%c0_21, %c0_22] : memref<8x256xf32, #tpu.memory_space<vmem>>, vector<8x256xf32>
    tpu.vector_store %arg9[%c0_21, %c0_22], %31 {strides = array<i32>} : memref<8x256xf32, #tpu.memory_space<vmem>>, vector<8x256xf32>,
    return
  }
  func.func @transform_0(%arg0: i32) -> (i32, i32) {
    %c0_i32 = arith.constant 0 : i32
    %c0_i32_0 = arith.constant 0 : i32
    return %c0_i32, %arg0 : i32, i32
  }
  func.func @transform_1(%arg0: i32) -> (i32, i32) {
    %c0_i32 = arith.constant 0 : i32
    %c0_i32_0 = arith.constant 0 : i32
    %c0_i32_1 = arith.constant 0 : i32
    return %c0_i32, %c0_i32_0 : i32, i32
  }
  func.func @transform_2(%arg0: i32) -> (i32, i32) {
    %c0_i32 = arith.constant 0 : i32
    %c0_i32_0 = arith.constant 0 : i32
    %c0_i32_1 = arith.constant 0 : i32
    return %c0_i32, %c0_i32_0 : i32, i32
  }
  func.func @transform_3(%arg0: i32) -> (i32, i32) {
    %c0_i32 = arith.constant 0 : i32
    %c0_i32_0 = arith.constant 0 : i32
    %c0_i32_1 = arith.constant 0 : i32
    return %c0_i32, %c0_i32_0 : i32, i32
  }
  func.func @transform_4(%arg0: i32) -> (i32, i32) {
    %c0_i32 = arith.constant 0 : i32
    %c0_i32_0 = arith.constant 0 : i32
    %c0_i32_1 = arith.constant 0 : i32
    return %c0_i32, %c0_i32_0 : i32, i32
  }
  func.func @transform_5(%arg0: i32) -> (i32, i32) {
    %c0_i32 = arith.constant 0 : i32
    %c0_i32_0 = arith.constant 0 : i32
    %c0_i32_1 = arith.constant 0 : i32
    return %c0_i32, %c0_i32_0 : i32, i32
  }
  func.func @transform_6(%arg0: i32) -> (i32, i32) {
    %c0_i32 = arith.constant 0 : i32
    %c0_i32_0 = arith.constant 0 : i32
    %c0_i32_1 = arith.constant 0 : i32
    return %c0_i32, %c0_i32_0 : i32, i32
  }
  func.func @transform_7(%arg0: i32) -> (i32, i32) {
    %c0_i32 = arith.constant 0 : i32
    %c0_i32_0 = arith.constant 0 : i32
    %c0_i32_1 = arith.constant 0 : i32
    return %c0_i32, %c0_i32_0 : i32, i32
  }
  func.func @transform_8(%arg0: i32) -> (i32, i32) {
    %c0_i32 = arith.constant 0 : i32
    %c0_i32_0 = arith.constant 0 : i32
    return %c0_i32, %arg0 : i32, i32
  }
}

</mosaic_0001>

<bundles_post_ra>
// kernel: tpu_custom_call.1
= control target key start
LH: loop header
LB: loop body
LE: loop exit
PB: predicated region body
PF: predicated region fallthrough
CT: control target
= control target key end

     0   :  { %13 = vsyncpa [#allocation3], 0  ;;  %s1984_s0 = inlined_call_operand.vmem [shape: f32[8,512], index: 0, kind: input, shape index: {}]   ;;  %s1985_s1 = inlined_call_operand.vmem [shape: f32[16,16], index: 1, kind: input, shape index: {}]   ;;  %s1986_s2 = inlined_call_operand.vmem [shape: f32[16,1], index: 2, kind: input, shape index: {}]   ;;  %s1987_s3 = inlined_call_operand.vmem [shape: f32[144,16], index: 3, kind: input, shape index: {}]   ;;  %s1988_s4 = inlined_call_operand.vmem [shape: f32[144,8], index: 4, kind: input, shape index: {}]   ;;  %s1989_s5 = inlined_call_operand.vmem [shape: f32[144,1], index: 5, kind: input, shape index: {}]   ;;  %s1990_s6 = inlined_call_operand.vmem [shape: f32[8,144], index: 6, kind: input, shape index: {}]   ;;  %s1991_s7 = inlined_call_operand.vmem [shape: f32[8,1], index: 7, kind: input, shape index: {}]   ;;  %s1992_s8 = inlined_call_operand.hbm [shape: f32[8,512], index: 8, kind: output, shape index: {}]  }
   0x1   :  { %15 = vsyncpa [#allocation3 + $0x1], 0  ;;  %s1517_s27 = smov 0   ;;  %s1519_s28 = smov 0  }
   0x2   :  { %s1521_s29 = smov 0   ;;  %s1523_s30 = smov 0  }
   0x3 LB: > { %s1538_s9 = sadd.s32 4294967295, %s1467_s30   ;;  %s1254_s10 = sadd.s32 4294967294, %s1467_s30   ;;  %s1467_s30 = sphi %s1523_s30, %s1998_s30   ;;  %s1463_s29 = sphi %s1521_s29, %s1997_s29   ;;  %s1459_s28 = sphi %s1519_s28, %s1996_s28   ;;  %s1455_s27 = sphi %s1517_s27, %s1995_s27  }
   0x4   : > { %s1542_s11 = sadd.s32 1, %s1467_s30   ;;  %s201_s12 = sadd.s32 1, %s1463_s29 }
   0x5   : > { %s198_s13 = ssub.s32 %s1467_s30, %s1542_s11  ;;  %p211_p0 = scmp.ne.s32.totalorder %s1463_s29, %s1459_s28 }
   0x6   : > { %p199_p1 = scmp.eq.s32.totalorder %s198_s13, 0  ;;  %p212_p2 = scmp.eq.s32.totalorder %s1538_s9, 1 }
   0x7   : > { %p217_p3 = scmp.ne.s32.totalorder %s1459_s28, %s1455_s27  ;;  %p218_p4 = scmp.eq.s32.totalorder %s1254_s10, 1 }
   0x8   : > { %s1553_s14 = scalar_select %p199_p1, %s1463_s29, %s201_s12  }
   0x9   : > { %p1555_p5 = por %p212_p2, %p211_p0  ;;  %p1559_p6 = por %p218_p4, %p217_p3 }
   0xa   : > { %p1257_p7 = scmp.ge.s32.totalorder %s1467_s30, 1  ;;  %p266_p8 = scmp.lt.s32.totalorder %s1467_s30, 3 }
   0xc   : > { %p267_p9 = pnand %p1257_p7, %p266_p8 }
   0xd   : > { %s1259_s17 = sshll.u32 (!%p267_p9), %s1538_s9, 1  ;;  %v1469_v0 = vmov (!%p267_p9), 0.0   ;;  %v1470_v1 = vmov (!%p267_p9), 0   ;;  %v397_v2 = vld [vmem:[%s1986_s2] sm:$0xff] (!%p267_p9)  ;;  %v398_v3 = vld [vmem:[%s1986_s2 + $0x8] sm:$0xff] (!%p267_p9)  ;;  %v726_v10 = vld [vmem:[%s1989_s5 + $0x10] sm:$0xff] (!%p267_p9) }
   0xe   : > { %270 = sbr.rel (%p267_p9) target bundleno = 834 (0x342), region = 52  ;;  %p301_p10 = scmp.lt.s32.totalorder (!%p267_p9), %s1259_s17, 3  ;;  %384 = vmatprep.mubr.f32.mxu0 (!%p267_p9), %v1469_v0  ;;  %597 = vmatprep.mubr.f32.mxu1 (!%p267_p9), %v1469_v0  ;;  %v311_v11 = vld [vmem:[%s1985_s1] sm:$0xff] (!%p267_p9)  ;;  %vm313_vm0 = vcmask (!%p267_p9), 130048   ;;  %v312_v13 = vld [vmem:[%s1985_s1 + $0x8] sm:$0xff] (!%p267_p9)  ;;  %v730_v14 = vld [vmem:[%s1989_s5 + $0x30] sm:$0xff] (!%p267_p9) }
   0xf   : > { %1391 = vset.pattern.permute.xlu0 (!%p267_p9), %v1470_v1  ;;  %1392 = vset.pattern.permute.xlu1 (!%p267_p9), %v1470_v1  ;;  %v728_v12 = vld [vmem:[%s1989_s5 + $0x20] sm:$0xff] (!%p267_p9)  ;;  %vm832_vm1 = vcmask (!%p267_p9), 64512   ;;  %v707_v17 = vld [vmem:[%s1988_s4 + $0x8] sm:$0xff] (!%p267_p9)  ;;  %v734_v18 = vld [vmem:[%s1989_s5 + $0x50] sm:$0xff] (!%p267_p9)  ;;  %s297_s10 = sand.u32 (!%p267_p9), 1, %s1459_s28   ;;  %s1305_s13 = sshll.u32 (!%p267_p9), %s1538_s9, 8 }
  0x10   : > { %401 = vperm.xlu0 (!%p267_p9), %1391, %v397_v2   ;;  %v706_v15 = vld [vmem:[%s1988_s4] sm:$0xff] (!%p267_p9)  ;;  %v708_v19 = vld [vmem:[%s1988_s4 + $0x10] sm:$0xff] (!%p267_p9)  ;;  %v709_v21 = vld [vmem:[%s1988_s4 + $0x18] sm:$0xff] (!%p267_p9)  ;;  %s1258_s12 = sshll.u32 (!%p267_p9), %s297_s10, 4  ;;  %s1942_s21 = scalar_lea.hbm (!%p267_p9), %s1992_s8, %s1305_s13 }
  0x11   : > { %v732_v16 = vld [vmem:[%s1989_s5 + $0x40] sm:$0xff] (!%p267_p9)  ;;  %v738_v22 = vld [vmem:[%s1989_s5 + $0x70] sm:$0xff] (!%p267_p9)  ;;  %v711_v25 = vld [vmem:[%s1988_s4 + $0x28] sm:$0xff] (!%p267_p9)  ;;  %s1181_s9 = scalar_lea.sflag (!%p267_p9), [#allocation3], %s297_s10 }
  0x12   : > { %v736_v20 = vld [vmem:[%s1989_s5 + $0x60] sm:$0xff] (!%p267_p9)  ;;  %v712_v27 = vld [vmem:[%s1988_s4 + $0x30] sm:$0xff] (!%p267_p9)  ;;  %v713_v28 = vld [vmem:[%s1988_s4 + $0x38] sm:$0xff] (!%p267_p9) }
  0x13   : > { %v710_v23 = vld [vmem:[%s1988_s4 + $0x20] sm:$0xff] (!%p267_p9)  ;;  %v715_v30 = vld [vmem:[%s1988_s4 + $0x48] sm:$0xff] (!%p267_p9)  ;;  %v716_v31 = vld [vmem:[%s1988_s4 + $0x50] sm:$0xff] (!%p267_p9) }
  0x14   : > { %406 = vperm.xlu0 (!%p267_p9), %1391, %v398_v3   ;;  %v740_v24 = vld [vmem:[%s1989_s5 + $0x80] sm:$0xff] (!%p267_p9)  ;;  %v717_v32 = vld [vmem:[%s1988_s4 + $0x58] sm:$0xff] (!%p267_p9)  ;;  %v719_v34 = vld [vmem:[%s1988_s4 + $0x68] sm:$0xff] (!%p267_p9) }
  0x15   : > { %s2000_s17 = smov (!%p301_p10, %s1259_s17), 3  ;;  %v1098_v26 = vld [vmem:[%s1991_s7] sm:$0xff]  ;;  %v720_v35 = vld [vmem:[%s1988_s4 + $0x70] sm:$0xff]  ;;  %v721_v36 = vld [vmem:[%s1988_s4 + $0x78] sm:$0xff] }
  0x16   : > { %s1260_s20 = sshll.u32 %s2000_s17, 3  ;;  %v714_v29 = vld [vmem:[%s1988_s4 + $0x40] sm:$0xff]  ;;  %v723_v38 = vld [vmem:[%s1988_s4 + $0x88] sm:$0xff]  ;;  %v727_v41 = vld [vmem:[%s1989_s5 + $0x18] sm:$0xff]  ;;  %s299_s17 = scalar_lea.vmem [#allocation2], %s1258_s12 }
  0x17   : > { %s304_s23 = scalar_lea.vmem %s1984_s0, %s1260_s20  ;;  %v718_v33 = vld [vmem:[%s1988_s4 + $0x60] sm:$0xff]  ;;  %v725_v40 = vld [vmem:[%s1989_s5 + $0x8] sm:$0xff]  ;;  %v731_v48 = vld [vmem:[%s1989_s5 + $0x38] sm:$0xff]  ;;  %s1195_s18 = sshll.u32 %s299_s17, 4  ;;  %s1944_s18 = int_to_ptr.vmem [resolvable:$true] %s1195_s18 }
  0x18   : > { %v308_v4 = vld [vmem:[%s304_s23 + $0x8] sm:$0xff]  ;;  %v307_v5 = vld [vmem:[%s304_s23] sm:$0xff]  ;;  %754 = vperm.xlu0 %1391, %v726_v10   ;;  %v735_v1 = vld [vmem:[%s1989_s5 + $0x58] sm:$0xff]  ;;  %s1405_s22 = scalar_lea.vmem %s1944_s18, 256  ;;  %s1471_s23 = smov [#allocation2]  }
  0x19   : > { %v310_v6 = vmul.f32 %v308_v4, %v308_v4  ;;  %v309_v7 = vmul.f32 %v307_v5, %v307_v5  ;;  %v722_v37 = vld [vmem:[%s1988_s4 + $0x80] sm:$0xff]  ;;  %v729_v44 = vld [vmem:[%s1989_s5 + $0x28] sm:$0xff]  ;;  %p1406_p11 = scmp.ne.s32.totalorder %s1944_s18, %s1405_s22  ;;  %s1409_s24 = sshll.u32 %s1471_s23, 4  ;;  %s1410_s24 = int_to_ptr.vmem [resolvable:$false] %s1409_s24 }
  0x1a   : > { %v724_v39 = vld [vmem:[%s1989_s5] sm:$0xff]  ;;  %v733_v57 = vld [vmem:[%s1989_s5 + $0x48] sm:$0xff]  ;;  %s1411_s25 = scalar_lea.vmem %s1410_s24, 512  ;;  %p1412_p0 = scmp.lt.s32.totalorder %s1944_s18, %s1410_s24 }
  0x1b   : > { %v1306_v8 = vpack.c.bf16 %v310_v6, %v308_v4  ;;  %v1308_v9 = vpack.c.bf16 %v309_v7, %v307_v5  ;;  %744 = vperm.xlu1 %1392, %v724_v39   ;;  %p1407_p12 = pnand %p1406_p11, %p1555_p5  ;;  %p1413_p1 = scmp.lt.s32.totalorder %s1411_s25, %s1405_s22 }
  0x1c   : > { %764 = vperm.xlu0 %1391, %v728_v12   ;;  %v739_v12 = vld [vmem:[%s1989_s5 + $0x78] sm:$0xff] }
  0x1d   : > { %1307 = vmatprep.subr.bf16.mxu0 %v1306_v8  ;;  %p1408_p13 = pneg %p1407_p12  ;;  %p1414_p2 = por %p1413_p1, %p1412_p0 }
  0x1e   : > { %1309 = vmatpush1.bf16.msra.mxu0 %v1308_v9 }
  0x1f   : > { %887 = vmatprep.subr.mxu0 %v308_v4  ;;  %749 = vperm.xlu1 %1392, %v725_v40   ;;  %p1415_p3 = pnand %p1414_p2, %p1408_p13 }
  0x20   : > { %774 = vperm.xlu0 %1391, %v730_v14  }
  0x21   : > { %1261 = vmatmul.mubr.msk.f32.vlgmr.msra.gmra.mrb[0].mxu0 %vm313_vm0, %v311_v11 }
  0x22   : > { %390 = vmatprep.mubr.f32.mxu0 %v1469_v0  ;;  %888 = vmatpush1.msra.mxu0 %v307_v5  ;;  %v737_v5 = vld [vmem:[%s1989_s5 + $0x68] sm:$0xff] }
  0x23   : > { %759 = vperm.xlu1 %1392, %v727_v41  }
  0x24   : > { %784 = vperm.xlu0 %1391, %v732_v16  }
  0x25   : > { %1262 = vmatmul.mubr.msk.f32.gmra.mrb[2].mxu0 %vm313_vm0, %v312_v13 }
  0x26   : > { %951 = vmatprep.mubr.f32.mxu0 %v1469_v0 }
  0x27   : > { %769 = vperm.xlu1 %1392, %v729_v44  }
  0x28   : > { %794 = vperm.xlu0 %1391, %v734_v18  }
  0x29   : > { %1281 = vmatmul.mubr.msk.f32.vlgmr.msra.gmra.mrb[4].mxu0 %vm832_vm1, %v706_v15 }
  0x2a   : > { %957 = vmatprep.mubr.f32.mxu0 %v1469_v0 }
  0x2b   : > { %779 = vperm.xlu1 %1392, %v731_v48  }
  0x2c   : > { %804 = vperm.xlu0 %1391, %v736_v20  }
  0x2d   : > { %1282 = vmatmul.mubr.msk.f32.gmra.mrb[6].mxu0 %vm832_vm1, %v707_v17 }
  0x2e   : > { %963 = vmatprep.mubr.f32.mxu0 %v1469_v0 }
  0x2f   : > { %789 = vperm.xlu1 %1392, %v733_v57  }
  0x30   : > { %814 = vperm.xlu0 %1391, %v738_v22  }
  0x31   : > { %1283 = vmatmul.mubr.msk.f32.gmra.mrb[8].mxu0 %vm832_vm1, %v708_v19 }
  0x32   : > { %969 = vmatprep.mubr.f32.mxu0 %v1469_v0 }
  0x33   : > { %799 = vperm.xlu1 %1392, %v735_v1  }
  0x34   : > { %824 = vperm.xlu0 %1391, %v740_v24  }
  0x35   : > { %1284 = vmatmul.mubr.msk.f32.gmra.mrb[10].mxu0 %vm832_vm1, %v709_v21  ;;  %v741_v21 = vld [vmem:[%s1989_s5 + $0x88] sm:$0xff] }
  0x36   : > { %975 = vmatprep.mubr.f32.mxu0 %v1469_v0 }
  0x37   : > { %809 = vperm.xlu1 %1392, %v737_v5  }
  0x38   : > { %1101 = vperm.xlu0 %1391, %v1098_v26  }
  0x39   : > { %1285 = vmatmul.mubr.msk.f32.gmra.mrb[12].mxu0 %vm832_vm1, %v710_v23 }
  0x3a   : > { %981 = vmatprep.mubr.f32.mxu0 %v1469_v0 }
  0x3b   : > { %819 = vperm.xlu1 %1392, %v739_v12  }
  0x3d   : > { %1286 = vmatmul.mubr.msk.f32.gmra.mrb[14].mxu0 %vm832_vm1, %v711_v25 }
  0x3e   : > { %987 = vmatprep.mubr.f32.mxu0 %v1469_v0 }
  0x3f   : > { %829 = vperm.xlu1 %1392, %v741_v21  }
  0x41   : > { %1287 = vmatmul.mubr.msk.f32.gmra.mrb[16].mxu0 %vm832_vm1, %v712_v27 }
  0x42   : > { %993 = vmatprep.mubr.f32.mxu0 %v1469_v0 }
  0x45   : > { %1288 = vmatmul.mubr.msk.f32.gmra.mrb[18].mxu0 %vm832_vm1, %v713_v28 }
  0x46   : > { %999 = vmatprep.mubr.f32.mxu0 %v1469_v0 }
  0x49   : > { %1289 = vmatmul.mubr.msk.f32.gmra.mrb[20].mxu0 %vm832_vm1, %v714_v29 }
  0x4a   : > { %1005 = vmatprep.mubr.f32.mxu0 %v1469_v0 }
  0x4d   : > { %1290 = vmatmul.mubr.msk.f32.gmra.mrb[22].mxu0 %vm832_vm1, %v715_v30 }
  0x4e   : > { %1011 = vmatprep.mubr.f32.mxu0 %v1469_v0 }
  0x51   : > { %1291 = vmatmul.mubr.msk.f32.gmra.mrb[24].mxu0 %vm832_vm1, %v716_v31 }
  0x52   : > { %1017 = vmatprep.mubr.f32.mxu0 %v1469_v0 }
  0x55   : > { %1292 = vmatmul.mubr.msk.f32.gmra.mrb[26].mxu0 %vm832_vm1, %v717_v32 }
  0x56   : > { %1023 = vmatprep.mubr.f32.mxu0 %v1469_v0 }
  0x59   : > { %1293 = vmatmul.mubr.msk.f32.gmra.mrb[28].mxu0 %vm832_vm1, %v718_v33 }
  0x5a   : > { %1029 = vmatprep.mubr.f32.mxu0 %v1469_v0 }
  0x5d   : > { %1294 = vmatmul.mubr.msk.f32.gmra.mrb[30].mxu0 %vm832_vm1, %v719_v34 }
  0x5e   : > { %1035 = vmatprep.mubr.f32.mxu0 %v1469_v0 }
  0x61   : > { %1295 = vmatmul.mubr.msk.f32.gmra.mrb[32].mxu0 %vm832_vm1, %v720_v35 }
  0x62   : > { %1041 = vmatprep.mubr.f32.mxu0 %v1469_v0 }
  0x65   : > { %1296 = vmatmul.mubr.msk.f32.gmra.mrb[34].mxu0 %vm832_vm1, %v721_v36 }
  0x66   : > { %1047 = vmatprep.mubr.f32.mxu0 %v1469_v0 }
  0x69   : > { %1297 = vmatmul.mubr.msk.f32.gmra.mrb[36].mxu0 %vm832_vm1, %v722_v37 }
  0x6a   : > { %1053 = vmatprep.mubr.f32.mxu0 %v1469_v0 }
  0x6d   : > { %1298 = vmatmul.mubr.msk.f32.gmra.mrb[38].mxu0 %vm832_vm1, %v723_v38 }
  0x8f   : > { %v402_v42 = vpop.permute.xlu0 %401 }
  0x93   : > { %v407_v46 = vpop.permute.xlu0 %406 }
  0xf4   : > { %v386_v43 = vpop.f32.mrb[0].mxu0 }
  0xf5   : > { %v388_v45 = vpop.f32.mrb[1].mxu0  ;;  %v409_v49 = vsub.f32 %v386_v43, %v402_v42 }
  0xf6   : > { %v410_v52 = vsub.f32 %v388_v45, %v402_v42 }
  0xf8   : > { %v392_v47 = vpop.f32.mrb[2].mxu0 }
  0xf9   : > { %v411_v50 = vsub.f32 %v392_v47, %v407_v46  ;;  %v394_v51 = vpop.f32.mrb[3].mxu0 }
  0xfa   : > { %v412_v53 = vsub.f32 %v394_v51, %v407_v46 }
  0xfb   : > { %v413_v54 = vmax.f32 %v409_v49, %v411_v50 }
  0xfc   : > { %v420_v55 = vmax.f32 %v410_v52, %v412_v53  ;;  %v1718_v56 = vpop.f32.mrb[4].mxu0 }
  0xfd   : > { %v414_v58 = vrot.slane %v413_v54, 4  ;;  %v1723_v59 = vpop.f32.mrb[5].mxu0 }
  0xfe   : > { %v421_v60 = vrot.slane %v420_v55, 4 }
  0xff   : > { %v415_v61 = vmax.f32 %v413_v54, %v414_v58 }
 0x100   : > { %v422_v62 = vmax.f32 %v420_v55, %v421_v60  ;;  %v1725_v63 = vpop.f32.mrb[6].mxu0 }
 0x101   : > { %v416_v2 = vrot.slane %v415_v61, 2  ;;  %v1730_v3 = vpop.f32.mrb[7].mxu0 }
 0x102   : > { %v423_v4 = vrot.slane %v422_v62, 2 }
 0x103   : > { %v417_v6 = vmax.f32 %v415_v61, %v416_v2 }
 0x104   : > { %v424_v7 = vmax.f32 %v422_v62, %v423_v4  ;;  %v1735_v8 = vpop.f32.mrb[8].mxu0 }
 0x105   : > { %v418_v9 = vrot.slane %v417_v6, 1  ;;  %v1737_v10 = vpop.f32.mrb[9].mxu0 }
 0x106   : > { %v425_v11 = vrot.slane %v424_v7, 1 }
 0x107   : > { %v419_v13 = vmax.f32 %v417_v6, %v418_v9 }
 0x108   : > { %v426_v14 = vmax.f32 %v424_v7, %v425_v11  ;;  %v1742_v15 = vpop.f32.mrb[10].mxu0 }
 0x109   : > { %v427_v16 = vsub.f32 %v409_v49, %v419_v13  ;;  %v429_v17 = vsub.f32 %v411_v50, %v419_v13  ;;  %v1744_v18 = vpop.f32.mrb[11].mxu0 }
 0x10a   : > { %v428_v19 = vsub.f32 %v410_v52, %v426_v14  ;;  %v430_v20 = vsub.f32 %v412_v53, %v426_v14 }
 0x10b   : > { %v431_v22 = vmul.f32 1.442695, %v427_v16  ;;  %v435_v23 = vmul.f32 1.442695, %v429_v17 }
 0x10c   : > { %v433_v24 = vmul.f32 1.442695, %v428_v19  ;;  %v437_v25 = vmul.f32 1.442695, %v430_v20  ;;  %v1749_v26 = vpop.f32.mrb[12].mxu0  ;;  %v461_v20 = vld [vmem:[%s1987_s3] sm:$0xff] }
 0x10d   : > { %1393 = vpow2.f32 %v431_v22  ;;  %v1751_v27 = vpop.f32.mrb[13].mxu0 }
 0x10e   : > { %1395 = vpow2.f32 %v435_v23 }
 0x10f   : > { %1397 = vpow2.f32 %v433_v24  ;;  %v462_v24 = vld [vmem:[%s1987_s3 + $0x8] sm:$0xff] }
 0x110   : > { %1399 = vpow2.f32 %v437_v25  ;;  %v1753_v28 = vpop.f32.mrb[14].mxu0  ;;  %v463_v25 = vld [vmem:[%s1987_s3 + $0x10] sm:$0xff] }
 0x111   : > { %v1755_v29 = vpop.f32.mrb[15].mxu0 }
 0x114   : > { %v1757_v30 = vpop.f32.mrb[16].mxu0 }
 0x115   : > { %v1759_v31 = vpop.f32.mrb[17].mxu0 }
 0x117   : > { %v1394_v32 = vpop.eup %1393 }
 0x118   : > { %v1396_v33 = vpop.eup %1395  ;;  %v1761_v34 = vpop.f32.mrb[18].mxu0 }
 0x119   : > { %v1398_v35 = vpop.eup %1397  ;;  %v439_v36 = vadd.f32 %v1396_v33, %v1394_v32  ;;  %v1763_v37 = vpop.f32.mrb[19].mxu0 }
 0x11a   : > { %v1400_v38 = vpop.eup %1399 }
 0x11b   : > { %v440_v39 = vrot.slane %v439_v36, 4  ;;  %v446_v40 = vadd.f32 %v1400_v38, %v1398_v35 }
 0x11c   : > { %v1765_v41 = vpop.f32.mrb[20].mxu0 }
 0x11d   : > { %v441_v42 = vadd.f32 %v440_v39, %v439_v36  ;;  %v447_v43 = vrot.slane %v446_v40, 4  ;;  %v1767_v44 = vpop.f32.mrb[21].mxu0  ;;  %v467_v36 = vld [vmem:[%s1987_s3 + $0x30] sm:$0xff]  ;;  %v469_v39 = vld [vmem:[%s1987_s3 + $0x40] sm:$0xff] }
 0x11f   : > { %v442_v45 = vrot.slane %v441_v42, 2  ;;  %v448_v46 = vadd.f32 %v447_v43, %v446_v40  ;;  %v470_v40 = vld [vmem:[%s1987_s3 + $0x48] sm:$0xff]  ;;  %v472_v43 = vld [vmem:[%s1987_s3 + $0x58] sm:$0xff] }
 0x120   : > { %v1769_v47 = vpop.f32.mrb[22].mxu0 }
 0x121   : > { %v1771_v48 = vpop.f32.mrb[23].mxu0  ;;  %v449_v49 = vrot.slane %v448_v46, 2  ;;  %v443_v50 = vadd.f32 %v442_v45, %v441_v42  ;;  %v471_v42 = vld [vmem:[%s1987_s3 + $0x50] sm:$0xff]  ;;  %v473_v45 = vld [vmem:[%s1987_s3 + $0x60] sm:$0xff] }
 0x123   : > { %v450_v51 = vadd.f32 %v449_v49, %v448_v46  ;;  %v444_v52 = vrot.slane %v443_v50, 1  ;;  %v474_v46 = vld [vmem:[%s1987_s3 + $0x68] sm:$0xff]  ;;  %v475_v49 = vld [vmem:[%s1987_s3 + $0x70] sm:$0xff] }
 0x124   : > { %v1773_v53 = vpop.f32.mrb[24].mxu0 }
 0x125   : > { %v1775_v54 = vpop.f32.mrb[25].mxu0  ;;  %v451_v55 = vrot.slane %v450_v51, 1  ;;  %v445_v57 = vadd.f32 %v444_v52, %v443_v50  ;;  %v476_v50 = vld [vmem:[%s1987_s3 + $0x78] sm:$0xff]  ;;  %v478_v52 = vld [vmem:[%s1987_s3 + $0x88] sm:$0xff] }
 0x127   : > { %v452_v58 = vadd.f32 %v451_v55, %v450_v51  ;;  %1401 = vrcp.f32 %v445_v57  ;;  %v477_v51 = vld [vmem:[%s1987_s3 + $0x80] sm:$0xff] }
 0x128   : > { %v1777_v60 = vpop.f32.mrb[26].mxu0 }
 0x129   : > { %v1779_v61 = vpop.f32.mrb[27].mxu0  ;;  %1403 = vrcp.f32 %v452_v58  ;;  %v1097_v58 = vld [vmem:[%s1990_s6 + $0x8] sm:$0xff] }
 0x12c   : > { %v1781_v62 = vpop.f32.mrb[28].mxu0 }
 0x12d   : > { %v1783_v1 = vpop.f32.mrb[29].mxu0 }
 0x130   : > { %v1785_v2 = vpop.f32.mrb[30].mxu0 }
 0x131   : > { %v1402_v4 = vpop.eup %1401  ;;  %v1787_v5 = vpop.f32.mrb[31].mxu0 }
 0x132   : > { %v457_v6 = vmul.f32 %v1402_v4, %v1394_v32  ;;  %v459_v7 = vmul.f32 %v1402_v4, %v1396_v33  ;;  %v464_v32 = vld [vmem:[%s1987_s3 + $0x18] sm:$0xff]  ;;  %v465_v33 = vld [vmem:[%s1987_s3 + $0x20] sm:$0xff]  ;;  %v745_v4 = vpop.permute.xlu1 %744 }
 0x133   : > { %v1404_v9 = vpop.eup %1403 }
 0x134   : > { %v1789_v11 = vpop.f32.mrb[32].mxu0  ;;  %v458_v12 = vmul.f32 %v1404_v9, %v1398_v35  ;;  %v460_v13 = vmul.f32 %v1404_v9, %v1400_v38  ;;  %v1312_v14 = vpack.c.bf16 %v459_v7, %v457_v6  ;;  %v466_v35 = vld [vmem:[%s1987_s3 + $0x28] sm:$0xff]  ;;  %v468_v38 = vld [vmem:[%s1987_s3 + $0x38] sm:$0xff]  ;;  %v954_v6 = vadd.f32 %v1718_v56, %v745_v4 }
 0x135   : > { %v1791_v16 = vpop.f32.mrb[33].mxu0 }
 0x136   : > { %v1310_v17 = vpack.c.bf16 %v460_v13, %v458_v12  ;;  %v750_v7 = vpop.permute.xlu1 %749 }
 0x137   : > { %v960_v12 = vadd.f32 %v1725_v63, %v750_v7 }
 0x138   : > { %1311 = vmatprep.subr.bf16.mxu1 %v1310_v17  ;;  %v1793_v19 = vpop.f32.mrb[34].mxu0  ;;  %v962_v17 = vadd.f32 %v1730_v3, %v750_v7 }
 0x139   : > { %1313 = vmatpush1.bf16.msra.mxu1 %v1312_v14  ;;  %v1798_v21 = vpop.f32.mrb[35].mxu0 }
 0x13c   : > { %1263 = vmatmul.mubr.msk.f32.vlgmr.msra.gmra.mrb[0].mxu1 %vm313_vm0, %v461_v20  ;;  %v1801_v22 = vpop.f32.mrb[36].mxu0 }
 0x13d   : > { %603 = vmatprep.mubr.f32.mxu1 %v1469_v0  ;;  %v1804_v23 = vpop.f32.mrb[37].mxu0 }
 0x140   : > { %1264 = vmatmul.mubr.msk.f32.gmra.mrb[2].mxu1 %vm313_vm0, %v462_v24  ;;  %v1890_v55 = vpop.f32.mrb[38].mxu0 }
 0x141   : > { %609 = vmatprep.mubr.f32.mxu1 %v1469_v0  ;;  %v1892_v57 = vpop.f32.mrb[39].mxu0 }
 0x144   : > { %1265 = vmatmul.mubr.msk.f32.gmra.mrb[4].mxu1 %vm313_vm0, %v463_v25 }
 0x145   : > { %615 = vmatprep.mubr.f32.mxu1 %v1469_v0 }
 0x148   : > { %1266 = vmatmul.mubr.msk.f32.gmra.mrb[6].mxu1 %vm313_vm0, %v464_v32 }
 0x149   : > { %621 = vmatprep.mubr.f32.mxu1 %v1469_v0 }
 0x14c   : > { %1267 = vmatmul.mubr.msk.f32.gmra.mrb[8].mxu1 %vm313_vm0, %v465_v33  ;;  %v755_v33 = vpop.permute.xlu0 %754 }
 0x14d   : > { %627 = vmatprep.mubr.f32.mxu1 %v1469_v0  ;;  %v968_v56 = vadd.f32 %v1737_v10, %v755_v33 }
 0x150   : > { %1268 = vmatmul.mubr.msk.f32.gmra.mrb[10].mxu1 %vm313_vm0, %v466_v35 }
 0x151   : > { %633 = vmatprep.mubr.f32.mxu1 %v1469_v0 }
 0x154   : > { %1269 = vmatmul.mubr.msk.f32.gmra.mrb[12].mxu1 %vm313_vm0, %v467_v36  ;;  %v966_v36 = vadd.f32 %v1735_v8, %v755_v33 }
 0x155   : > { %639 = vmatprep.mubr.f32.mxu1 %v1469_v0 }
 0x158   : > { %1270 = vmatmul.mubr.msk.f32.gmra.mrb[14].mxu1 %vm313_vm0, %v468_v38 }
 0x159   : > { %645 = vmatprep.mubr.f32.mxu1 %v1469_v0 }
 0x15c   : > { %1271 = vmatmul.mubr.msk.f32.gmra.mrb[16].mxu1 %vm313_vm0, %v469_v39 }
 0x15d   : > { %651 = vmatprep.mubr.f32.mxu1 %v1469_v0 }
 0x160   : > { %1272 = vmatmul.mubr.msk.f32.gmra.mrb[18].mxu1 %vm313_vm0, %v470_v40 }
 0x161   : > { %657 = vmatprep.mubr.f32.mxu1 %v1469_v0 }
 0x164   : > { %1273 = vmatmul.mubr.msk.f32.gmra.mrb[20].mxu1 %vm313_vm0, %v471_v42 }
 0x165   : > { %663 = vmatprep.mubr.f32.mxu1 %v1469_v0 }
 0x168   : > { %1274 = vmatmul.mubr.msk.f32.gmra.mrb[22].mxu1 %vm313_vm0, %v472_v43 }
 0x169   : > { %669 = vmatprep.mubr.f32.mxu1 %v1469_v0 }
 0x16c   : > { %1275 = vmatmul.mubr.msk.f32.gmra.mrb[24].mxu1 %vm313_vm0, %v473_v45 }
 0x16d   : > { %675 = vmatprep.mubr.f32.mxu1 %v1469_v0 }
 0x170   : > { %1276 = vmatmul.mubr.msk.f32.gmra.mrb[26].mxu1 %vm313_vm0, %v474_v46 }
 0x171   : > { %681 = vmatprep.mubr.f32.mxu1 %v1469_v0 }
 0x174   : > { %1277 = vmatmul.mubr.msk.f32.gmra.mrb[28].mxu1 %vm313_vm0, %v475_v49 }
 0x175   : > { %687 = vmatprep.mubr.f32.mxu1 %v1469_v0 }
 0x178   : > { %1278 = vmatmul.mubr.msk.f32.gmra.mrb[30].mxu1 %vm313_vm0, %v476_v50 }
 0x179   : > { %693 = vmatprep.mubr.f32.mxu1 %v1469_v0 }
 0x17c   : > { %1279 = vmatmul.mubr.msk.f32.gmra.mrb[32].mxu1 %vm313_vm0, %v477_v51  ;;  %v765_v51 = vpop.permute.xlu0 %764 }
 0x17d   : > { %699 = vmatprep.mubr.f32.mxu1 %v1469_v0  ;;  %v956_v0 = vadd.f32 %v1723_v59, %v745_v4  ;;  %v760_v59 = vpop.permute.xlu1 %759 }
 0x17e   : > { %v972_v63 = vadd.f32 %v1742_v15, %v760_v59  ;;  %v974_v3 = vadd.f32 %v1744_v18, %v760_v59 }
 0x180   : > { %1280 = vmatmul.mubr.msk.f32.gmra.mrb[34].mxu1 %vm313_vm0, %v478_v52  ;;  %v978_v52 = vadd.f32 %v1749_v26, %v765_v51 }
 0x181   : > { %1299 = vmatprep.mubr.msk.f32.mxu1 %vm313_vm0, %v1097_v58  ;;  %v980_v58 = vadd.f32 %v1751_v27, %v765_v51  ;;  %v770_v4 = vpop.permute.xlu1 %769 }
 0x20f   : > { %v599_v9 = vpop.f32.mrb[0].mxu1 }
 0x210   : > { %v1060_v13 = vmul.f32 %v954_v6, %v599_v9  ;;  %v601_v14 = vpop.f32.mrb[1].mxu1  ;;  %v986_v9 = vadd.f32 %v1755_v29, %v770_v4 }
 0x211   : > { %v1061_v20 = vmul.f32 %v956_v0, %v601_v14  ;;  %v984_v0 = vadd.f32 %v1753_v28, %v770_v4 }
 0x213   : > { %v605_v24 = vpop.f32.mrb[2].mxu1 }
 0x214   : > { %v1062_v25 = vmul.f32 %v960_v12, %v605_v24  ;;  %v607_v32 = vpop.f32.mrb[3].mxu1 }
 0x215   : > { %v1063_v35 = vmul.f32 %v962_v17, %v607_v32  ;;  %v780_v32 = vpop.permute.xlu1 %779 }
 0x216   : > { %v1316_v38 = vpack.c.bf16 %v1062_v25, %v1060_v13 }
 0x217   : > { %v1314_v39 = vpack.c.bf16 %v1063_v35, %v1061_v20  ;;  %v611_v40 = vpop.f32.mrb[4].mxu1  ;;  %v775_v20 = vpop.permute.xlu0 %774  ;;  %v996_v35 = vadd.f32 %v1761_v34, %v780_v32 }
 0x218   : > { %v1064_v42 = vmul.f32 %v966_v36, %v611_v40  ;;  %v613_v43 = vpop.f32.mrb[5].mxu1  ;;  %v990_v24 = vadd.f32 %v1757_v30, %v775_v20  ;;  %v992_v25 = vadd.f32 %v1759_v31, %v775_v20 }
 0x219   : > { %v1065_v45 = vmul.f32 %v968_v56, %v613_v43  ;;  %1315 = vmatprep.subr.bf16.mxu1 %v1314_v39 }
 0x21a   : > { %1317 = vmatpush1.bf16.msra.mxu1 %v1316_v38  ;;  %v998_v38 = vadd.f32 %v1763_v37, %v780_v32 }
 0x21b   : > { %v617_v46 = vpop.f32.mrb[6].mxu1 }
 0x21c   : > { %v1066_v49 = vmul.f32 %v972_v63, %v617_v46  ;;  %v619_v50 = vpop.f32.mrb[7].mxu1  ;;  %v785_v63 = vpop.permute.xlu0 %784 }
 0x21d   : > { %v1067_v8 = vmul.f32 %v974_v3, %v619_v50  ;;  %v1004_v43 = vadd.f32 %v1767_v44, %v785_v63 }
 0x21e   : > { %v1320_v10 = vpack.c.bf16 %v1066_v49, %v1064_v42  ;;  %v1002_v42 = vadd.f32 %v1765_v41, %v785_v63  ;;  %v790_v49 = vpop.permute.xlu1 %789 }
 0x21f   : > { %v1318_v6 = vpack.c.bf16 %v1067_v8, %v1065_v45  ;;  %v623_v15 = vpop.f32.mrb[8].mxu1  ;;  %v1008_v37 = vadd.f32 %v1769_v47, %v790_v49  ;;  %v1010_v51 = vadd.f32 %v1771_v48, %v790_v49 }
 0x220   : > { %v1068_v7 = vmul.f32 %v978_v52, %v623_v15  ;;  %v625_v18 = vpop.f32.mrb[9].mxu1 }
 0x221   : > { %v1069_v12 = vmul.f32 %v980_v58, %v625_v18  ;;  %1319 = vmatprep.subr.bf16.mxu1 %v1318_v6  ;;  %v795_v58 = vpop.permute.xlu0 %794 }
 0x222   : > { %1321 = vmatpush1.bf16.msra.mxu1 %v1320_v10  ;;  %v1014_v4 = vadd.f32 %v1773_v53, %v795_v58  ;;  %v1016_v6 = vadd.f32 %v1775_v54, %v795_v58 }
 0x223   : > { %v629_v13 = vpop.f32.mrb[10].mxu1 }
 0x224   : > { %v1070_v14 = vmul.f32 %v984_v0, %v629_v13  ;;  %v631_v17 = vpop.f32.mrb[11].mxu1 }
 0x225   : > { %v1071_v26 = vmul.f32 %v986_v9, %v631_v17  ;;  %v800_v9 = vpop.permute.xlu1 %799  ;;  %v805_v20 = vpop.permute.xlu0 %804 }
 0x226   : > { %v1324_v27 = vpack.c.bf16 %v1070_v14, %v1068_v7  ;;  %v1020_v47 = vadd.f32 %v1777_v60, %v800_v9  ;;  %v1022_v48 = vadd.f32 %v1779_v61, %v800_v9 }
 0x227   : > { %v1322_v33 = vpack.c.bf16 %v1071_v26, %v1069_v12  ;;  %v635_v28 = vpop.f32.mrb[12].mxu1  ;;  %v1026_v26 = vadd.f32 %v1781_v62, %v805_v20 }
 0x228   : > { %v1072_v36 = vmul.f32 %v990_v24, %v635_v28  ;;  %v637_v29 = vpop.f32.mrb[13].mxu1  ;;  %v1028_v24 = vadd.f32 %v1783_v1, %v805_v20 }
 0x229   : > { %v1073_v56 = vmul.f32 %v992_v25, %v637_v29  ;;  %1323 = vmatprep.subr.bf16.mxu1 %v1322_v33  ;;  %v810_v28 = vpop.permute.xlu1 %809 }
 0x22a   : > { %1325 = vmatpush1.bf16.msra.mxu1 %v1324_v27  ;;  %v1032_v60 = vadd.f32 %v1785_v2, %v810_v28  ;;  %v1034_v61 = vadd.f32 %v1787_v5, %v810_v28 }
 0x22b   : > { %v641_v59 = vpop.f32.mrb[14].mxu1 }
 0x22c   : > { %v1074_v39 = vmul.f32 %v996_v35, %v641_v59  ;;  %v643_v40 = vpop.f32.mrb[15].mxu1 }
 0x22d   : > { %v1075_v30 = vmul.f32 %v998_v38, %v643_v40 }
 0x22e   : > { %v1328_v31 = vpack.c.bf16 %v1074_v39, %v1072_v36 }
 0x22f   : > { %v1326_v3 = vpack.c.bf16 %v1075_v30, %v1073_v56  ;;  %v647_v45 = vpop.f32.mrb[16].mxu1  ;;  %v815_v56 = vpop.permute.xlu0 %814 }
 0x230   : > { %v1076_v34 = vmul.f32 %v1002_v42, %v647_v45  ;;  %v649_v46 = vpop.f32.mrb[17].mxu1  ;;  %v1038_v59 = vadd.f32 %v1789_v11, %v815_v56  ;;  %v1040_v39 = vadd.f32 %v1791_v16, %v815_v56 }
 0x231   : > { %v1077_v50 = vmul.f32 %v1004_v43, %v649_v46  ;;  %1327 = vmatprep.subr.bf16.mxu1 %v1326_v3 }
 0x232   : > { %1329 = vmatpush1.bf16.msra.mxu1 %v1328_v31  ;;  %v820_v31 = vpop.permute.xlu1 %819 }
 0x233   : > { %v653_v8 = vpop.f32.mrb[18].mxu1  ;;  %v1044_v2 = vadd.f32 %v1793_v19, %v820_v31  ;;  %v1046_v5 = vadd.f32 %v1798_v21, %v820_v31  ;;  %v825_v46 = vpop.permute.xlu0 %824 }
 0x234   : > { %v1078_v52 = vmul.f32 %v1008_v37, %v653_v8  ;;  %v655_v10 = vpop.f32.mrb[19].mxu1  ;;  %v1050_v49 = vadd.f32 %v1801_v22, %v825_v46 }
 0x235   : > { %v1079_v41 = vmul.f32 %v1010_v51, %v655_v10 }
 0x236   : > { %v1332_v44 = vpack.c.bf16 %v1078_v52, %v1076_v34  ;;  %v830_v37 = vpop.permute.xlu1 %829 }
 0x237   : > { %v1330_v15 = vpack.c.bf16 %v1079_v41, %v1077_v50  ;;  %v659_v0 = vpop.f32.mrb[20].mxu1  ;;  %v1052_v50 = vadd.f32 %v1804_v23, %v825_v46  ;;  %v1056_v21 = vadd.f32 %v1890_v55, %v830_v37  ;;  %v1058_v58 = vadd.f32 %v1892_v57, %v830_v37  ;;  %v1102_v55 = vpop.permute.xlu0 %1101 }
 0x238   : > { %v1080_v7 = vmul.f32 %v1014_v4, %v659_v0  ;;  %v661_v18 = vpop.f32.mrb[21].mxu1 }
 0x239   : > { %v1081_v12 = vmul.f32 %v1016_v6, %v661_v18  ;;  %1331 = vmatprep.subr.bf16.mxu1 %v1330_v15  ;;  %v1096_v15 = vld [vmem:[%s1990_s6] sm:$0xff] }
 0x23a   : > { %1333 = vmatpush1.bf16.msra.mxu1 %v1332_v44 }
 0x23b   : > { %v665_v13 = vpop.f32.mrb[22].mxu1 }
 0x23c   : > { %v1082_v14 = vmul.f32 %v1020_v47, %v665_v13  ;;  %v667_v17 = vpop.f32.mrb[23].mxu1 }
 0x23d   : > { %v1083_v53 = vmul.f32 %v1022_v48, %v667_v17 }
 0x23e   : > { %v1336_v54 = vpack.c.bf16 %v1082_v14, %v1080_v7 }
 0x23f   : > { %v1334_v27 = vpack.c.bf16 %v1083_v53, %v1081_v12  ;;  %v671_v25 = vpop.f32.mrb[24].mxu1 }
 0x240   : > { %v1084_v32 = vmul.f32 %v1026_v26, %v671_v25  ;;  %v673_v33 = vpop.f32.mrb[25].mxu1 }
 0x241   : > { %v1085_v35 = vmul.f32 %v1028_v24, %v673_v33  ;;  %1335 = vmatprep.subr.bf16.mxu1 %v1334_v27 }
 0x242   : > { %1337 = vmatpush1.bf16.msra.mxu1 %v1336_v54 }
 0x243   : > { %v677_v36 = vpop.f32.mrb[26].mxu1 }
 0x244   : > { %v1086_v29 = vmul.f32 %v1032_v60, %v677_v36  ;;  %v679_v38 = vpop.f32.mrb[27].mxu1 }
 0x245   : > { %v1087_v62 = vmul.f32 %v1034_v61, %v679_v38 }
 0x246   : > { %v1340_v1 = vpack.c.bf16 %v1086_v29, %v1084_v32 }
 0x247   : > { %v1338_v40 = vpack.c.bf16 %v1087_v62, %v1085_v35  ;;  %v683_v63 = vpop.f32.mrb[28].mxu1 }
 0x248   : > { %v1088_v30 = vmul.f32 %v1038_v59, %v683_v63  ;;  %v685_v42 = vpop.f32.mrb[29].mxu1 }
 0x249   : > { %v1089_v43 = vmul.f32 %v1040_v39, %v685_v42  ;;  %1339 = vmatprep.subr.bf16.mxu1 %v1338_v40 }
 0x24a   : > { %1341 = vmatpush1.bf16.msra.mxu1 %v1340_v1 }
 0x24b   : > { %v689_v3 = vpop.f32.mrb[30].mxu1 }
 0x24c   : > { %v1090_v45 = vmul.f32 %v1044_v2, %v689_v3  ;;  %v691_v34 = vpop.f32.mrb[31].mxu1 }
 0x24d   : > { %v1091_v11 = vmul.f32 %v1046_v5, %v691_v34 }
 0x24e   : > { %v1344_v16 = vpack.c.bf16 %v1090_v45, %v1088_v30 }
 0x24f   : > { %v1342_v51 = vpack.c.bf16 %v1091_v11, %v1089_v43  ;;  %v695_v8 = vpop.f32.mrb[32].mxu1 }
 0x250   : > { %v1092_v52 = vmul.f32 %v1050_v49, %v695_v8  ;;  %v697_v10 = vpop.f32.mrb[33].mxu1 }
 0x251   : > { %v1093_v19 = vmul.f32 %v1052_v50, %v697_v10  ;;  %1343 = vmatprep.subr.bf16.mxu1 %v1342_v51 }
 0x252   : > { %1345 = vmatpush1.bf16.msra.mxu1 %v1344_v16 }
 0x253   : > { %v701_v41 = vpop.f32.mrb[34].mxu1 }
 0x254   : > { %v1094_v4 = vmul.f32 %v1056_v21, %v701_v41  ;;  %v703_v22 = vpop.f32.mrb[35].mxu1 }
 0x255   : > { %v1095_v44 = vmul.f32 %v1058_v58, %v703_v22 }
 0x256   : > { %v1348_v6 = vpack.c.bf16 %v1094_v4, %v1092_v52 }
 0x257   : > { %v1346_v23 = vpack.c.bf16 %v1095_v44, %v1093_v19 }
 0x259   : > { %1347 = vmatprep.subr.bf16.mxu1 %v1346_v23 }
 0x25a   : > { %1349 = vmatpush1.bf16.msra.mxu1 %v1348_v6 }
 0x25d   : > { %1172 = vmatmul.mubr.f32.vlgmr.msra.gmra.mrb[36].mxu1 %v1096_v15 }
 0x330   : > { %v1173_v57 = vpop.f32.mrb[36].mxu1 }
 0x331   : > { %v1174_v0 = vadd.f32 %v1173_v57, %v1102_v55  ;;  %v1175_v7 = vpop.f32.mrb[37].mxu1 }
 0x332   : > { %v1176_v18 = vadd.f32 %v1175_v7, %v1102_v55 }
 0x333   : > { %1178 = vst [vmem:[%s299_s17] sm:$0xff] %v1174_v0 }
 0x334   : > { %1179 = vst [vmem:[%s299_s17 + $0x8] sm:$0xff] %v1176_v18 }
 0x335   : > { %1418 = shalt.err (!%p1415_p3)
}
 0x336   : > { %s1419_s26 = scalar_lea.hbm %s1942_s21, 256  ;;  %s1423_s13 = scalar_lea.hbm %s1992_s8, 512 }
 0x337   : > { %p1420_p4 = scmp.ne.s32.totalorder %s1942_s21, %s1419_s26  ;;  %p1424_p9 = scmp.lt.u32.totalorder %s1942_s21, %s1992_s8 }
 0x338   : > { %p1425_p10 = scmp.lt.u32.totalorder %s1423_s13, %s1419_s26  ;;  %p1427_p12 = scmp.lt.u32.totalorder %s1419_s26, %s1942_s21 }
 0x339   : > { %p1421_p7 = pnand %p1420_p4, %p1555_p5 }
 0x33a   : > { %p1426_p11 = por %p1425_p10, %p1424_p9 }
 0x33b   : > { %p1422_p8 = pneg %p1421_p7 }
 0x33c   : > { %p1428_p13 = por %p1427_p12, %p1426_p11 }
 0x33e   : > { %p1429_p0 = pnand %p1428_p13, %p1422_p8 }
 0x340   : > { %1432 = shalt.err (!%p1429_p0)
}
 0x341   : > { %1350 = dma.vmem_to_hbm [thread:$0]  (%p1555_p5), %s1944_s18, 256, %s1942_s21, %s1181_s9  }
 0x342 PF: > { %p1356_p1 = scmp.ge.s32.totalorder %s1467_s30, 2  ;;  %s1207_s20 = sand.u32 1, %s1455_s27  }
 0x343   : > { %s1208_s22 = scalar_lea.sflag [#allocation3], %s1207_s20 }
 0x344   : > { %p1353_p2 = pnand %p1356_p1, %p1559_p6 }
 0x346   : > { %1450 = dma.done.wait (!%p1353_p2), %s1208_s22, 256  }
 0x347   : > { %1452 = vsyncadd (!%p1353_p2), %s1208_s22, 4294967040  ;;  %p18_p3 = scmp.ge.s32.totalorder %s1542_s11, 4   ;;  %s1995_s27 = smov %s1459_s28 }
 0x348   : > { %s1996_s28 = smov %s1463_s29  ;;  %s1997_s29 = smov %s1553_s14 }
 0x349   : > { %s1998_s30 = smov %s1542_s11  ;;  %20 = sbr.rel (!%p18_p3) target bundleno = 3 (0x3), region = 87 }
 0x350   :  { %1213 = vsyncpa [#allocation3], 1 }
 0x351   :  { %1215 = vsyncpa [#allocation3 + $0x1], 1 }

</bundles_post_ra>
